<compile_context>
chip_gen: v5e
topology: v5e:2x2
jax: 0.10.0
libtpu: 0.0.40
codegen_flags: <defaults>
</compile_context>

<pallas_src>
import functools

import jax
import jax.numpy as jnp
from jax.experimental import pallas as pl
from jax.experimental.pallas import tpu as pltpu

INPUT_SIZE = 6
HIDDEN_SIZE = 16
OUTPUT_SIZE = 4


def _round_up(n, m):
    return ((n + m - 1) // m) * m


def mlp_kernel(x_ref, w1_ref, b1_ref, w2_ref, b2_ref, o_ref):
    """One batch tile: o^T = W2 @ relu(W1 @ x^T + b1) + b2.

    x_ref : (INPUT_SIZE, TILE_B)        lane-dense over the batch
    w1_ref: (HIDDEN_SIZE, INPUT_SIZE)   PyTorch nn.Linear layout (out, in)
    b1_ref: (HIDDEN_SIZE, 1)
    w2_ref: (OUTPUT_SIZE, HIDDEN_SIZE)
    b2_ref: (OUTPUT_SIZE, 1)
    o_ref : (OUTPUT_SIZE, TILE_B)
    """
    xT = x_ref[...]
    w1 = w1_ref[...]
    w2 = w2_ref[...]

    # fc1: unrolled VPU outer-product accumulation over the 6-wide contraction.
    h = w1[:, 0:1] * xT[0:1, :]
    for k in range(1, INPUT_SIZE):
        h = h + w1[:, k:k + 1] * xT[k:k + 1, :]
    h = jnp.maximum(h + b1_ref[...], 0.0)

    # fc2: same over the 16-wide contraction.
    y = w2[:, 0:1] * h[0:1, :]
    for j in range(1, HIDDEN_SIZE):
        y = y + w2[:, j:j + 1] * h[j:j + 1, :]
    o_ref[...] = (y + b2_ref[...]).astype(o_ref.dtype)


def neural_agent_forward(x, w1, b1, w2, b2, *, tile_b=1024):
    """x: (B, INPUT_SIZE).  Weights in PyTorch nn.Linear layout:
    w1 (HIDDEN, INPUT), b1 (HIDDEN,), w2 (OUTPUT, HIDDEN), b2 (OUTPUT,).
    Returns (B, OUTPUT_SIZE)."""
    B = x.shape[0]
    # Batch tile: multiple of 128 lanes; clamp for small B.  VMEM use is tiny
    # (a few hundred KiB even at tile_b=1024), safe for v7x's 64 MiB as well.
    tb = min(tile_b, _round_up(B, 128))
    Bp = _round_up(B, tb)

    # Layout plumbing only: put the batch on the lane axis, pad to the tile.
    xT = x.T
    if Bp != B:
        xT = jnp.pad(xT, ((0, 0), (0, Bp - B)))

    out_t = pl.pallas_call(
        mlp_kernel,
        out_shape=jax.ShapeDtypeStruct((OUTPUT_SIZE, Bp), x.dtype),
        grid=(Bp // tb,),
        in_specs=[
            pl.BlockSpec((INPUT_SIZE, tb), lambda i: (0, i)),
            pl.BlockSpec((HIDDEN_SIZE, INPUT_SIZE), lambda i: (0, 0)),
            pl.BlockSpec((HIDDEN_SIZE, 1), lambda i: (0, 0)),
            pl.BlockSpec((OUTPUT_SIZE, HIDDEN_SIZE), lambda i: (0, 0)),
            pl.BlockSpec((OUTPUT_SIZE, 1), lambda i: (0, 0)),
        ],
        out_specs=pl.BlockSpec((OUTPUT_SIZE, tb), lambda i: (0, i)),
        compiler_params=pltpu.CompilerParams(
            dimension_semantics=("parallel",)),
    )(xT, w1, b1.reshape(HIDDEN_SIZE, 1), w2, b2.reshape(OUTPUT_SIZE, 1))

    return out_t[:, :B].T


def init_params(key):
    # nn.Linear default init: U(-1/sqrt(fan_in), 1/sqrt(fan_in)).
    k1, k2, k3, k4 = jax.random.split(key, 4)
    bound1 = 1.0 / jnp.sqrt(INPUT_SIZE)
    bound2 = 1.0 / jnp.sqrt(HIDDEN_SIZE)
    w1 = jax.random.uniform(k1, (HIDDEN_SIZE, INPUT_SIZE), jnp.float32, -bound1, bound1)
    b1 = jax.random.uniform(k2, (HIDDEN_SIZE,), jnp.float32, -bound1, bound1)
    w2 = jax.random.uniform(k3, (OUTPUT_SIZE, HIDDEN_SIZE), jnp.float32, -bound2, bound2)
    b2 = jax.random.uniform(k4, (OUTPUT_SIZE,), jnp.float32, -bound2, bound2)
    return w1, b1, w2, b2


if __name__ == "__main__":
    key = jax.random.PRNGKey(0)
    kx, kp = jax.random.split(key)
    # Batch many agent observations per call (the whole point of the rewrite);
    # B is a non-multiple of the tile to exercise the pad/slice path.
    B = 1000
    x = jax.random.normal(kx, (B, INPUT_SIZE), jnp.float32)
    w1, b1, w2, b2 = init_params(kp)

    fwd = jax.jit(functools.partial(neural_agent_forward, tile_b=256))
    out = jax.block_until_ready(fwd(x, w1, b1, w2, b2))

    # Reference check in plain JAX (PyTorch nn.Linear semantics).
    ref = jnp.maximum(x @ w1.T + b1, 0.0) @ w2.T + b2
    assert out.shape == (B, OUTPUT_SIZE)
    assert jnp.allclose(out, ref, atol=1e-5, rtol=1e-5), float(jnp.max(jnp.abs(out - ref)))

    print("KERNEL_OK")
</pallas_src>

<mosaic_0001>
module attributes {stable_mosaic.version = 11 : i64} {
  func.func @mlp_kernel(%arg0: i32, %arg1: memref<6x256xf32, #tpu.memory_space<vmem>>, %arg2: memref<16x6xf32, #tpu.memory_space<vmem>>, %arg3: memref<16x1xf32, #tpu.memory_space<vmem>>, %arg4: memref<4x16xf32, #tpu.memory_space<vmem>>, %arg5: memref<4x1xf32, #tpu.memory_space<vmem>>, %arg6: memref<4x256xf32, #tpu.memory_space<vmem>>) attributes {dimension_semantics = [#tpu.dimension_semantics<parallel>], iteration_bounds = array<i64: 4>, scalar_prefetch = 0 : i64, scratch_operands = 0 : i64, tpu.core_type = #tpu.core_type<tc>, window_params = [{transform_indices = @transform_0, window_bounds = array<i64: 6, 256>}, {pipeline_mode = #tpu.pipeline_mode<synchronous>, transform_indices = @transform_1, window_bounds = array<i64: 16, 6>}, {pipeline_mode = #tpu.pipeline_mode<synchronous>, transform_indices = @transform_2, window_bounds = array<i64: 16, 1>}, {pipeline_mode = #tpu.pipeline_mode<synchronous>, transform_indices = @transform_3, window_bounds = array<i64: 4, 16>}, {pipeline_mode = #tpu.pipeline_mode<synchronous>, transform_indices = @transform_4, window_bounds = array<i64: 4, 1>}, {transform_indices = @transform_5, window_bounds = array<i64: 4, 256>}]} {
    %c0 = arith.constant 0 : index
    %c0_0 = arith.constant 0 : index
    %0 = vector.load %arg1[%c0, %c0_0] : memref<6x256xf32, #tpu.memory_space<vmem>>, vector<6x256xf32>
    %c0_1 = arith.constant 0 : index
    %c0_2 = arith.constant 0 : index
    %1 = vector.load %arg2[%c0_1, %c0_2] : memref<16x6xf32, #tpu.memory_space<vmem>>, vector<16x6xf32>
    %c0_3 = arith.constant 0 : index
    %c0_4 = arith.constant 0 : index
    %2 = vector.load %arg4[%c0_3, %c0_4] : memref<4x16xf32, #tpu.memory_space<vmem>>, vector<4x16xf32>
    %3 = vector.extract_strided_slice %1 {offsets = [0, 0], sizes = [16, 1], strides = [1, 1]} : vector<16x6xf32> to vector<16x1xf32>
    %4 = vector.extract_strided_slice %0 {offsets = [0, 0], sizes = [1, 256], strides = [1, 1]} : vector<6x256xf32> to vector<1x256xf32>
    %5 = vector.broadcast %3 : vector<16x1xf32> to vector<16x256xf32>
    %6 = vector.broadcast %4 : vector<1x256xf32> to vector<16x256xf32>
    %7 = arith.mulf %5, %6 : vector<16x256xf32>
    %8 = vector.extract_strided_slice %1 {offsets = [0, 1], sizes = [16, 1], strides = [1, 1]} : vector<16x6xf32> to vector<16x1xf32>
    %9 = vector.extract_strided_slice %0 {offsets = [1, 0], sizes = [1, 256], strides = [1, 1]} : vector<6x256xf32> to vector<1x256xf32>
    %10 = vector.broadcast %8 : vector<16x1xf32> to vector<16x256xf32>
    %11 = vector.broadcast %9 : vector<1x256xf32> to vector<16x256xf32>
    %12 = arith.mulf %10, %11 : vector<16x256xf32>
    %13 = arith.addf %7, %12 : vector<16x256xf32>
    %14 = vector.extract_strided_slice %1 {offsets = [0, 2], sizes = [16, 1], strides = [1, 1]} : vector<16x6xf32> to vector<16x1xf32>
    %15 = vector.extract_strided_slice %0 {offsets = [2, 0], sizes = [1, 256], strides = [1, 1]} : vector<6x256xf32> to vector<1x256xf32>
    %16 = vector.broadcast %14 : vector<16x1xf32> to vector<16x256xf32>
    %17 = vector.broadcast %15 : vector<1x256xf32> to vector<16x256xf32>
    %18 = arith.mulf %16, %17 : vector<16x256xf32>
    %19 = arith.addf %13, %18 : vector<16x256xf32>
    %20 = vector.extract_strided_slice %1 {offsets = [0, 3], sizes = [16, 1], strides = [1, 1]} : vector<16x6xf32> to vector<16x1xf32>
    %21 = vector.extract_strided_slice %0 {offsets = [3, 0], sizes = [1, 256], strides = [1, 1]} : vector<6x256xf32> to vector<1x256xf32>
    %22 = vector.broadcast %20 : vector<16x1xf32> to vector<16x256xf32>
    %23 = vector.broadcast %21 : vector<1x256xf32> to vector<16x256xf32>
    %24 = arith.mulf %22, %23 : vector<16x256xf32>
    %25 = arith.addf %19, %24 : vector<16x256xf32>
    %26 = vector.extract_strided_slice %1 {offsets = [0, 4], sizes = [16, 1], strides = [1, 1]} : vector<16x6xf32> to vector<16x1xf32>
    %27 = vector.extract_strided_slice %0 {offsets = [4, 0], sizes = [1, 256], strides = [1, 1]} : vector<6x256xf32> to vector<1x256xf32>
    %28 = vector.broadcast %26 : vector<16x1xf32> to vector<16x256xf32>
    %29 = vector.broadcast %27 : vector<1x256xf32> to vector<16x256xf32>
    %30 = arith.mulf %28, %29 : vector<16x256xf32>
    %31 = arith.addf %25, %30 : vector<16x256xf32>
    %32 = vector.extract_strided_slice %1 {offsets = [0, 5], sizes = [16, 1], strides = [1, 1]} : vector<16x6xf32> to vector<16x1xf32>
    %33 = vector.extract_strided_slice %0 {offsets = [5, 0], sizes = [1, 256], strides = [1, 1]} : vector<6x256xf32> to vector<1x256xf32>
    %34 = vector.broadcast %32 : vector<16x1xf32> to vector<16x256xf32>
    %35 = vector.broadcast %33 : vector<1x256xf32> to vector<16x256xf32>
    %36 = arith.mulf %34, %35 : vector<16x256xf32>
    %37 = arith.addf %31, %36 : vector<16x256xf32>
    %c0_5 = arith.constant 0 : index
    %c0_6 = arith.constant 0 : index
    %38 = vector.load %arg3[%c0_5, %c0_6] : memref<16x1xf32, #tpu.memory_space<vmem>>, vector<16x1xf32>
    %39 = vector.broadcast %38 : vector<16x1xf32> to vector<16x256xf32>
    %40 = arith.addf %37, %39 : vector<16x256xf32>
    %cst = arith.constant 0.000000e+00 : f32
    %41 = vector.broadcast %cst : f32 to vector<16x256xf32>
    %42 = arith.maximumf %40, %41 : vector<16x256xf32>
    %43 = vector.extract_strided_slice %2 {offsets = [0, 0], sizes = [4, 1], strides = [1, 1]} : vector<4x16xf32> to vector<4x1xf32>
    %44 = vector.extract_strided_slice %42 {offsets = [0, 0], sizes = [1, 256], strides = [1, 1]} : vector<16x256xf32> to vector<1x256xf32>
    %45 = vector.broadcast %43 : vector<4x1xf32> to vector<4x256xf32>
    %46 = vector.broadcast %44 : vector<1x256xf32> to vector<4x256xf32>
    %47 = arith.mulf %45, %46 : vector<4x256xf32>
    %48 = vector.extract_strided_slice %2 {offsets = [0, 1], sizes = [4, 1], strides = [1, 1]} : vector<4x16xf32> to vector<4x1xf32>
    %49 = vector.extract_strided_slice %42 {offsets = [1, 0], sizes = [1, 256], strides = [1, 1]} : vector<16x256xf32> to vector<1x256xf32>
    %50 = vector.broadcast %48 : vector<4x1xf32> to vector<4x256xf32>
    %51 = vector.broadcast %49 : vector<1x256xf32> to vector<4x256xf32>
    %52 = arith.mulf %50, %51 : vector<4x256xf32>
    %53 = arith.addf %47, %52 : vector<4x256xf32>
    %54 = vector.extract_strided_slice %2 {offsets = [0, 2], sizes = [4, 1], strides = [1, 1]} : vector<4x16xf32> to vector<4x1xf32>
    %55 = vector.extract_strided_slice %42 {offsets = [2, 0], sizes = [1, 256], strides = [1, 1]} : vector<16x256xf32> to vector<1x256xf32>
    %56 = vector.broadcast %54 : vector<4x1xf32> to vector<4x256xf32>
    %57 = vector.broadcast %55 : vector<1x256xf32> to vector<4x256xf32>
    %58 = arith.mulf %56, %57 : vector<4x256xf32>
    %59 = arith.addf %53, %58 : vector<4x256xf32>
    %60 = vector.extract_strided_slice %2 {offsets = [0, 3], sizes = [4, 1], strides = [1, 1]} : vector<4x16xf32> to vector<4x1xf32>
    %61 = vector.extract_strided_slice %42 {offsets = [3, 0], sizes = [1, 256], strides = [1, 1]} : vector<16x256xf32> to vector<1x256xf32>
    %62 = vector.broadcast %60 : vector<4x1xf32> to vector<4x256xf32>
    %63 = vector.broadcast %61 : vector<1x256xf32> to vector<4x256xf32>
    %64 = arith.mulf %62, %63 : vector<4x256xf32>
    %65 = arith.addf %59, %64 : vector<4x256xf32>
    %66 = vector.extract_strided_slice %2 {offsets = [0, 4], sizes = [4, 1], strides = [1, 1]} : vector<4x16xf32> to vector<4x1xf32>
    %67 = vector.extract_strided_slice %42 {offsets = [4, 0], sizes = [1, 256], strides = [1, 1]} : vector<16x256xf32> to vector<1x256xf32>
    %68 = vector.broadcast %66 : vector<4x1xf32> to vector<4x256xf32>
    %69 = vector.broadcast %67 : vector<1x256xf32> to vector<4x256xf32>
    %70 = arith.mulf %68, %69 : vector<4x256xf32>
    %71 = arith.addf %65, %70 : vector<4x256xf32>
    %72 = vector.extract_strided_slice %2 {offsets = [0, 5], sizes = [4, 1], strides = [1, 1]} : vector<4x16xf32> to vector<4x1xf32>
    %73 = vector.extract_strided_slice %42 {offsets = [5, 0], sizes = [1, 256], strides = [1, 1]} : vector<16x256xf32> to vector<1x256xf32>
    %74 = vector.broadcast %72 : vector<4x1xf32> to vector<4x256xf32>
    %75 = vector.broadcast %73 : vector<1x256xf32> to vector<4x256xf32>
    %76 = arith.mulf %74, %75 : vector<4x256xf32>
    %77 = arith.addf %71, %76 : vector<4x256xf32>
    %78 = vector.extract_strided_slice %2 {offsets = [0, 6], sizes = [4, 1], strides = [1, 1]} : vector<4x16xf32> to vector<4x1xf32>
    %79 = vector.extract_strided_slice %42 {offsets = [6, 0], sizes = [1, 256], strides = [1, 1]} : vector<16x256xf32> to vector<1x256xf32>
    %80 = vector.broadcast %78 : vector<4x1xf32> to vector<4x256xf32>
    %81 = vector.broadcast %79 : vector<1x256xf32> to vector<4x256xf32>
    %82 = arith.mulf %80, %81 : vector<4x256xf32>
    %83 = arith.addf %77, %82 : vector<4x256xf32>
    %84 = vector.extract_strided_slice %2 {offsets = [0, 7], sizes = [4, 1], strides = [1, 1]} : vector<4x16xf32> to vector<4x1xf32>
    %85 = vector.extract_strided_slice %42 {offsets = [7, 0], sizes = [1, 256], strides = [1, 1]} : vector<16x256xf32> to vector<1x256xf32>
    %86 = vector.broadcast %84 : vector<4x1xf32> to vector<4x256xf32>
    %87 = vector.broadcast %85 : vector<1x256xf32> to vector<4x256xf32>
    %88 = arith.mulf %86, %87 : vector<4x256xf32>
    %89 = arith.addf %83, %88 : vector<4x256xf32>
    %90 = vector.extract_strided_slice %2 {offsets = [0, 8], sizes = [4, 1], strides = [1, 1]} : vector<4x16xf32> to vector<4x1xf32>
    %91 = vector.extract_strided_slice %42 {offsets = [8, 0], sizes = [1, 256], strides = [1, 1]} : vector<16x256xf32> to vector<1x256xf32>
    %92 = vector.broadcast %90 : vector<4x1xf32> to vector<4x256xf32>
    %93 = vector.broadcast %91 : vector<1x256xf32> to vector<4x256xf32>
    %94 = arith.mulf %92, %93 : vector<4x256xf32>
    %95 = arith.addf %89, %94 : vector<4x256xf32>
    %96 = vector.extract_strided_slice %2 {offsets = [0, 9], sizes = [4, 1], strides = [1, 1]} : vector<4x16xf32> to vector<4x1xf32>
    %97 = vector.extract_strided_slice %42 {offsets = [9, 0], sizes = [1, 256], strides = [1, 1]} : vector<16x256xf32> to vector<1x256xf32>
    %98 = vector.broadcast %96 : vector<4x1xf32> to vector<4x256xf32>
    %99 = vector.broadcast %97 : vector<1x256xf32> to vector<4x256xf32>
    %100 = arith.mulf %98, %99 : vector<4x256xf32>
    %101 = arith.addf %95, %100 : vector<4x256xf32>
    %102 = vector.extract_strided_slice %2 {offsets = [0, 10], sizes = [4, 1], strides = [1, 1]} : vector<4x16xf32> to vector<4x1xf32>
    %103 = vector.extract_strided_slice %42 {offsets = [10, 0], sizes = [1, 256], strides = [1, 1]} : vector<16x256xf32> to vector<1x256xf32>
    %104 = vector.broadcast %102 : vector<4x1xf32> to vector<4x256xf32>
    %105 = vector.broadcast %103 : vector<1x256xf32> to vector<4x256xf32>
    %106 = arith.mulf %104, %105 : vector<4x256xf32>
    %107 = arith.addf %101, %106 : vector<4x256xf32>
    %108 = vector.extract_strided_slice %2 {offsets = [0, 11], sizes = [4, 1], strides = [1, 1]} : vector<4x16xf32> to vector<4x1xf32>
    %109 = vector.extract_strided_slice %42 {offsets = [11, 0], sizes = [1, 256], strides = [1, 1]} : vector<16x256xf32> to vector<1x256xf32>
    %110 = vector.broadcast %108 : vector<4x1xf32> to vector<4x256xf32>
    %111 = vector.broadcast %109 : vector<1x256xf32> to vector<4x256xf32>
    %112 = arith.mulf %110, %111 : vector<4x256xf32>
    %113 = arith.addf %107, %112 : vector<4x256xf32>
    %114 = vector.extract_strided_slice %2 {offsets = [0, 12], sizes = [4, 1], strides = [1, 1]} : vector<4x16xf32> to vector<4x1xf32>
    %115 = vector.extract_strided_slice %42 {offsets = [12, 0], sizes = [1, 256], strides = [1, 1]} : vector<16x256xf32> to vector<1x256xf32>
    %116 = vector.broadcast %114 : vector<4x1xf32> to vector<4x256xf32>
    %117 = vector.broadcast %115 : vector<1x256xf32> to vector<4x256xf32>
    %118 = arith.mulf %116, %117 : vector<4x256xf32>
    %119 = arith.addf %113, %118 : vector<4x256xf32>
    %120 = vector.extract_strided_slice %2 {offsets = [0, 13], sizes = [4, 1], strides = [1, 1]} : vector<4x16xf32> to vector<4x1xf32>
    %121 = vector.extract_strided_slice %42 {offsets = [13, 0], sizes = [1, 256], strides = [1, 1]} : vector<16x256xf32> to vector<1x256xf32>
    %122 = vector.broadcast %120 : vector<4x1xf32> to vector<4x256xf32>
    %123 = vector.broadcast %121 : vector<1x256xf32> to vector<4x256xf32>
    %124 = arith.mulf %122, %123 : vector<4x256xf32>
    %125 = arith.addf %119, %124 : vector<4x256xf32>
    %126 = vector.extract_strided_slice %2 {offsets = [0, 14], sizes = [4, 1], strides = [1, 1]} : vector<4x16xf32> to vector<4x1xf32>
    %127 = vector.extract_strided_slice %42 {offsets = [14, 0], sizes = [1, 256], strides = [1, 1]} : vector<16x256xf32> to vector<1x256xf32>
    %128 = vector.broadcast %126 : vector<4x1xf32> to vector<4x256xf32>
    %129 = vector.broadcast %127 : vector<1x256xf32> to vector<4x256xf32>
    %130 = arith.mulf %128, %129 : vector<4x256xf32>
    %131 = arith.addf %125, %130 : vector<4x256xf32>
    %132 = vector.extract_strided_slice %2 {offsets = [0, 15], sizes = [4, 1], strides = [1, 1]} : vector<4x16xf32> to vector<4x1xf32>
    %133 = vector.extract_strided_slice %42 {offsets = [15, 0], sizes = [1, 256], strides = [1, 1]} : vector<16x256xf32> to vector<1x256xf32>
    %134 = vector.broadcast %132 : vector<4x1xf32> to vector<4x256xf32>
    %135 = vector.broadcast %133 : vector<1x256xf32> to vector<4x256xf32>
    %136 = arith.mulf %134, %135 : vector<4x256xf32>
    %137 = arith.addf %131, %136 : vector<4x256xf32>
    %c0_7 = arith.constant 0 : index
    %c0_8 = arith.constant 0 : index
    %138 = vector.load %arg5[%c0_7, %c0_8] : memref<4x1xf32, #tpu.memory_space<vmem>>, vector<4x1xf32>
    %139 = vector.broadcast %138 : vector<4x1xf32> to vector<4x256xf32>
    %140 = arith.addf %137, %139 : vector<4x256xf32>
    %c0_9 = arith.constant 0 : index
    %c0_10 = arith.constant 0 : index
    %141 = vector.load %arg6[%c0_9, %c0_10] : memref<4x256xf32, #tpu.memory_space<vmem>>, vector<4x256xf32>
    tpu.vector_store %arg6[%c0_9, %c0_10], %140 {strides = array<i32>} : memref<4x256xf32, #tpu.memory_space<vmem>>, vector<4x256xf32>,
    return
  }
  func.func @transform_0(%arg0: i32) -> (i32, i32) {
    %c0_i32 = arith.constant 0 : i32
    %c0_i32_0 = arith.constant 0 : i32
    return %c0_i32, %arg0 : i32, i32
  }
  func.func @transform_1(%arg0: i32) -> (i32, i32) {
    %c0_i32 = arith.constant 0 : i32
    %c0_i32_0 = arith.constant 0 : i32
    %c0_i32_1 = arith.constant 0 : i32
    return %c0_i32, %c0_i32_0 : i32, i32
  }
  func.func @transform_2(%arg0: i32) -> (i32, i32) {
    %c0_i32 = arith.constant 0 : i32
    %c0_i32_0 = arith.constant 0 : i32
    %c0_i32_1 = arith.constant 0 : i32
    return %c0_i32, %c0_i32_0 : i32, i32
  }
  func.func @transform_3(%arg0: i32) -> (i32, i32) {
    %c0_i32 = arith.constant 0 : i32
    %c0_i32_0 = arith.constant 0 : i32
    %c0_i32_1 = arith.constant 0 : i32
    return %c0_i32, %c0_i32_0 : i32, i32
  }
  func.func @transform_4(%arg0: i32) -> (i32, i32) {
    %c0_i32 = arith.constant 0 : i32
    %c0_i32_0 = arith.constant 0 : i32
    %c0_i32_1 = arith.constant 0 : i32
    return %c0_i32, %c0_i32_0 : i32, i32
  }
  func.func @transform_5(%arg0: i32) -> (i32, i32) {
    %c0_i32 = arith.constant 0 : i32
    %c0_i32_0 = arith.constant 0 : i32
    return %c0_i32, %arg0 : i32, i32
  }
}

</mosaic_0001>

<bundles_post_ra>
// kernel: neural_agent_forward.1
= control target key start
LH: loop header
LB: loop body
LE: loop exit
PB: predicated region body
PF: predicated region fallthrough
CT: control target
= control target key end

     0   :  { %s706_s18 = smov 0   ;;  %s816_s0 = inlined_call_operand.vmem [shape: f32[6,1024], index: 0, kind: input, shape index: {}]   ;;  %s817_s1 = inlined_call_operand.vmem [shape: f32[16,6], index: 1, kind: input, shape index: {}]   ;;  %s818_s2 = inlined_call_operand.vmem [shape: f32[16,1], index: 2, kind: input, shape index: {}]   ;;  %s819_s3 = inlined_call_operand.vmem [shape: f32[4,16], index: 3, kind: input, shape index: {}]   ;;  %s820_s4 = inlined_call_operand.vmem [shape: f32[4,1], index: 4, kind: input, shape index: {}]   ;;  %s821_s5 = inlined_call_operand.vmem [shape: f32[4,1024], index: 5, kind: output, shape index: {}]  }
   0x1 LB: > { %s589_s19 = sadd.s32 4294967295, %s658_s18   ;;  %p593_p0 = scmp.ge.s32.totalorder %s658_s18, 1  ;;  %s658_s18 = sphi %s706_s18, %s15_s18  }
   0x2   : > { %p188_p1 = scmp.lt.s32.totalorder %s658_s18, 5 }
   0x4   : > { %p189_p2 = pnand %p593_p0, %p188_p1 }
   0x5   : > { %s594_s7 = sshll.u32 (!%p189_p2), %s589_s19, 1 }
   0x6   : > { %192 = sbr.rel (%p189_p2) target bundleno = 237 (0xed), region = 40  ;;  %p217_p3 = scmp.lt.s32.totalorder (!%p189_p2), %s594_s7, 7 }
   0xb   : > { %v230_v0 = vld [vmem:[%s817_s1] sm:$0xff]  ;;  %v660_v1 = vmov 2   ;;  %v661_v2 = vmov 1   ;;  %v662_v3 = vmov 0   ;;  %v231_v4 = vld [vmem:[%s817_s1 + $0x8] sm:$0xff]  ;;  %v663_v5 = vmov 4  }
   0xc   : > { %626 = vset.pattern.permute.xlu2 %v660_v1  ;;  %625 = vset.pattern.permute.xlu1 %v661_v2  ;;  %v664_v6 = vmov 3   ;;  %v665_v7 = vmov 5   ;;  %v340_v8 = vld [vmem:[%s818_s2 + $0x8] sm:$0xff]  ;;  %v339_v9 = vld [vmem:[%s818_s2] sm:$0xff]  ;;  %v666_v11 = vmov 7   ;;  %v667_v12 = vmov 12  }
   0xd   : > { %624 = vset.pattern.permute.xlu0 %v662_v3  ;;  %268 = vperm.xlu2 %626, %v230_v0   ;;  %v232_v10 = vld [vmem:[%s819_s3] sm:$0xf]  ;;  %v668_v13 = vmov 6   ;;  %v669_v14 = vmov 8   ;;  %v670_v15 = vmov 9   ;;  %v671_v16 = vmov 10  }
   0xe   : > { %250 = vperm.xlu1 %625, %v230_v0   ;;  %235 = vperm.xlu0 %624, %v230_v0   ;;  %v672_v17 = vmov 11   ;;  %v673_v18 = vmov 13   ;;  %v674_v19 = vmov 14   ;;  %v518_v20 = vld [vmem:[%s820_s4] sm:$0xf]  ;;  %v675_v21 = vmov 15  }
   0xf   : > { %s823_s7 = smov (!%p217_p3, %s594_s7), 7  ;;  %vm529_vm0 = vcmask 1043456  }
  0x10   : > { %s595_s8 = sshll.u32 %s823_s7, 3  ;;  %s597_s12 = sshll.u32 %s823_s7, 2 }
  0x11   : > { %s220_s11 = scalar_lea.vmem %s816_s0, %s595_s8  ;;  %s226_s15 = scalar_lea.vmem %s821_s5, %s597_s12 }
  0x12   : > { %v747_v28 = vld [vmem:[%s220_s11] sm:$0x3f]  ;;  %v749_v29 = vld [vmem:[%s220_s11 + $0x8] sm:$0x3f] }
  0x13   : > { %v257_v32 = vperm.slane %v747_v28, 1  ;;  %v258_v33 = vperm.slane %v749_v29, 1  ;;  %v243_v34 = vperm.slane %v747_v28, 0  ;;  %v244_v35 = vperm.slane %v749_v29, 0 }
  0x14   : > { %v275_v36 = vperm.slane %v747_v28, 2  ;;  %v276_v37 = vperm.slane %v749_v29, 2  ;;  %v293_v43 = vperm.slane %v747_v28, 3  ;;  %v294_v44 = vperm.slane %v749_v29, 3 }
  0x15   : > { %272 = vperm.xlu2 %626, %v231_v4   ;;  %v311_v51 = vperm.slane %v747_v28, 4  ;;  %v312_v52 = vperm.slane %v749_v29, 4  ;;  %v329_v57 = vperm.slane %v747_v28, 5  ;;  %v330_v58 = vperm.slane %v749_v29, 5 }
  0x16   : > { %254 = vperm.xlu1 %625, %v231_v4   ;;  %240 = vperm.xlu0 %624, %v231_v4  }
  0x1d   : > { %629 = vset.pattern.permute.xlu2 %v663_v5 }
  0x1e   : > { %628 = vset.pattern.permute.xlu1 %v664_v6  ;;  %627 = vset.pattern.permute.xlu0 %v664_v6 }
  0x1f   : > { %304 = vperm.xlu2 %629, %v230_v0   ;;  %290 = vperm.xlu1 %628, %v231_v4  }
  0x20   : > { %286 = vperm.xlu0 %627, %v230_v0  }
  0x27   : > { %631 = vset.pattern.permute.xlu2 %v665_v7  ;;  %630 = vset.pattern.permute.xlu1 %v663_v5 }
  0x28   : > { %632 = vset.pattern.permute.xlu0 %v665_v7  ;;  %322 = vperm.xlu2 %631, %v230_v0  }
  0x29   : > { %308 = vperm.xlu1 %630, %v231_v4   ;;  %326 = vperm.xlu0 %632, %v231_v4  }
  0x30   : > { %634 = vset.pattern.permute.xlu2 %v662_v3 }
  0x31   : > { %633 = vset.pattern.permute.xlu1 %v662_v3  ;;  %636 = vset.pattern.permute.xlu0 %v660_v1 }
  0x32   : > { %348 = vperm.xlu2 %634, %v340_v8   ;;  %343 = vperm.xlu1 %633, %v339_v9  }
  0x33   : > { %379 = vperm.xlu0 %636, %v232_v10  }
  0x3a   : > { %635 = vset.pattern.permute.xlu2 %v661_v2  ;;  %361 = vperm.xlu1 %633, %v232_v10  }
  0x3b   : > { %641 = vset.pattern.permute.xlu0 %v666_v11  ;;  %369 = vperm.xlu2 %635, %v232_v10  }
  0x3c   : > { %429 = vperm.xlu0 %641, %v232_v10  }
  0x42   : > { %637 = vset.pattern.permute.xlu1 %v664_v6 }
  0x43   : > { %638 = vset.pattern.permute.xlu2 %v663_v5  ;;  %389 = vperm.xlu1 %637, %v232_v10  }
  0x44   : > { %646 = vset.pattern.permute.xlu0 %v667_v12  ;;  %399 = vperm.xlu2 %638, %v232_v10  }
  0x45   : > { %479 = vperm.xlu0 %646, %v232_v10  }
  0x4b   : > { %639 = vset.pattern.permute.xlu1 %v665_v7 }
  0x4c   : > { %640 = vset.pattern.permute.xlu2 %v668_v13  ;;  %409 = vperm.xlu1 %639, %v232_v10  }
  0x4d   : > { %419 = vperm.xlu2 %640, %v232_v10   ;;  %651 = vset.pattern.permute.xlu0 %v662_v3 }
  0x54   : > { %642 = vset.pattern.permute.xlu1 %v669_v14 }
  0x55   : > { %643 = vset.pattern.permute.xlu2 %v670_v15  ;;  %439 = vperm.xlu1 %642, %v232_v10  }
  0x56   : > { %449 = vperm.xlu2 %643, %v232_v10  }
  0x5d   : > { %644 = vset.pattern.permute.xlu1 %v671_v16 }
  0x5e   : > { %645 = vset.pattern.permute.xlu2 %v672_v17  ;;  %459 = vperm.xlu1 %644, %v232_v10  }
  0x5f   : > { %469 = vperm.xlu2 %645, %v232_v10  }
  0x66   : > { %647 = vset.pattern.permute.xlu1 %v673_v18 }
  0x67   : > { %648 = vset.pattern.permute.xlu2 %v674_v19  ;;  %489 = vperm.xlu1 %647, %v232_v10   ;;  %v269_v22 = vpop.permute.xlu2 %268 }
  0x68   : > { %499 = vperm.xlu2 %648, %v232_v10   ;;  %v277_v46 = vmul.f32 %v275_v36, %v269_v22  ;;  %v278_v47 = vmul.f32 %v276_v37, %v269_v22 }
  0x6f   : > { %649 = vset.pattern.permute.xlu1 %v675_v21  ;;  %v739_v24 = vpop.permute.xlu2 %272 }
  0x70   : > { %509 = vperm.xlu1 %649, %v232_v10   ;;  %650 = vset.pattern.permute.xlu2 %v662_v3  ;;  %v280_v21 = vmul.f32 %v276_v37, %v739_v24 }
  0x71   : > { %521 = vperm.xlu2 %650, %v518_v20   ;;  %v279_v20 = vmul.f32 %v275_v36, %v739_v24 }
  0x79   : > { %v305_v27 = vpop.permute.xlu2 %304 }
  0x7a   : > { %v313_v60 = vmul.f32 %v311_v51, %v305_v27  ;;  %v314_v61 = vmul.f32 %v312_v52, %v305_v27 }
  0x80   : > { %v251_v23 = vpop.permute.xlu1 %250  ;;  %v236_v25 = vpop.permute.xlu0 %235 }
  0x81   : > { %v259_v39 = vmul.f32 %v257_v32, %v251_v23  ;;  %v260_v40 = vmul.f32 %v258_v33, %v251_v23  ;;  %v245_v41 = vmul.f32 %v243_v34, %v236_v25  ;;  %v246_v42 = vmul.f32 %v244_v35, %v236_v25 }
  0x82   : > { %v323_v38 = vpop.permute.xlu2 %322 }
  0x83   : > { %v263_v48 = vadd.f32 %v259_v39, %v245_v41  ;;  %v264_v49 = vadd.f32 %v260_v40, %v246_v42  ;;  %v331_v1 = vmul.f32 %v329_v57, %v323_v38  ;;  %v332_v2 = vmul.f32 %v330_v58, %v323_v38 }
  0x85   : > { %v281_v55 = vadd.f32 %v277_v46, %v263_v48  ;;  %v282_v56 = vadd.f32 %v278_v47, %v264_v49 }
  0x88   : > { %v255_v26 = vpop.permute.xlu1 %254  ;;  %v241_v30 = vpop.permute.xlu0 %240 }
  0x89   : > { %v261_v10 = vmul.f32 %v257_v32, %v255_v26  ;;  %v262_v11 = vmul.f32 %v258_v33, %v255_v26  ;;  %v247_v12 = vmul.f32 %v243_v34, %v241_v30  ;;  %v248_v13 = vmul.f32 %v244_v35, %v241_v30 }
  0x8b   : > { %v265_v17 = vadd.f32 %v261_v10, %v247_v12  ;;  %v266_v18 = vadd.f32 %v262_v11, %v248_v13 }
  0x8c   : > { %v763_v59 = vpop.permute.xlu2 %348 }
  0x8d   : > { %v283_v29 = vadd.f32 %v279_v20, %v265_v17  ;;  %v284_v30 = vadd.f32 %v280_v21, %v266_v18 }
  0x91   : > { %v291_v31 = vpop.permute.xlu1 %290 }
  0x92   : > { %v287_v45 = vpop.permute.xlu0 %286  ;;  %v297_v22 = vmul.f32 %v293_v43, %v291_v31  ;;  %v298_v23 = vmul.f32 %v294_v44, %v291_v31 }
  0x93   : > { %v295_v53 = vmul.f32 %v293_v43, %v287_v45  ;;  %v296_v54 = vmul.f32 %v294_v44, %v287_v45 }
  0x94   : > { %v301_v39 = vadd.f32 %v297_v22, %v283_v29  ;;  %v302_v24 = vadd.f32 %v298_v23, %v284_v30 }
  0x95   : > { %v299_v62 = vadd.f32 %v295_v53, %v281_v55  ;;  %v300_v63 = vadd.f32 %v296_v54, %v282_v56  ;;  %v370_v7 = vpop.permute.xlu2 %369 }
  0x97   : > { %v317_v3 = vadd.f32 %v313_v60, %v299_v62  ;;  %v318_v4 = vadd.f32 %v314_v61, %v300_v63 }
  0x99   : > { %v335_v5 = vadd.f32 %v331_v1, %v317_v3  ;;  %v336_v6 = vadd.f32 %v332_v2, %v318_v4 }
  0x9b   : > { %v309_v50 = vpop.permute.xlu1 %308  ;;  %v327_v19 = vpop.permute.xlu0 %326 }
  0x9c   : > { %v315_v32 = vmul.f32 %v311_v51, %v309_v50  ;;  %v316_v33 = vmul.f32 %v312_v52, %v309_v50  ;;  %v333_v44 = vmul.f32 %v329_v57, %v327_v19  ;;  %v334_v45 = vmul.f32 %v330_v58, %v327_v19 }
  0x9e   : > { %v400_v34 = vpop.permute.xlu2 %399  ;;  %v319_v42 = vadd.f32 %v315_v32, %v301_v39  ;;  %v320_v43 = vadd.f32 %v316_v33, %v302_v24 }
  0xa0   : > { %v337_v55 = vadd.f32 %v333_v44, %v319_v42  ;;  %v338_v56 = vadd.f32 %v334_v45, %v320_v43 }
  0xa2   : > { %v353_v4 = vadd.f32 %v763_v59, %v337_v55 }
  0xa4   : > { %v344_v0 = vpop.permute.xlu1 %343 }
  0xa5   : > { %v351_v8 = vadd.f32 %v344_v0, %v335_v5  ;;  %v352_v9 = vadd.f32 %v344_v0, %v336_v6  ;;  %v380_v50 = vpop.permute.xlu0 %379  ;;  %v354_v5 = vadd.f32 %v763_v59, %v338_v56 }
  0xa7   : > { %v765_v15 = vmax.f32 %v351_v8, 0.0  ;;  %v767_v16 = vmax.f32 %v352_v9, 0.0  ;;  %v420_v58 = vpop.permute.xlu2 %419  ;;  %v789_v17 = vmax.f32 %v354_v5, 0.0 }
  0xa9   : > { %v364_v25 = vperm.slane %v765_v15, 0  ;;  %v365_v26 = vperm.slane %v767_v16, 0  ;;  %v372_v27 = vperm.slane %v765_v15, 1  ;;  %v373_v28 = vperm.slane %v767_v16, 1 }
  0xaa   : > { %v382_v31 = vperm.slane %v765_v15, 2  ;;  %v383_v37 = vperm.slane %v767_v16, 2  ;;  %v392_v48 = vperm.slane %v765_v15, 3  ;;  %v393_v49 = vperm.slane %v767_v16, 3 }
  0xab   : > { %v374_v40 = vmul.f32 %v372_v27, %v370_v7  ;;  %v375_v41 = vmul.f32 %v373_v28, %v370_v7  ;;  %v402_v62 = vperm.slane %v765_v15, 4  ;;  %v403_v57 = vperm.slane %v767_v16, 4 }
  0xac   : > { %v362_v14 = vpop.permute.xlu1 %361  ;;  %v384_v51 = vmul.f32 %v382_v31, %v380_v50  ;;  %v385_v52 = vmul.f32 %v383_v37, %v380_v50  ;;  %v412_v2 = vperm.slane %v765_v15, 5  ;;  %v413_v3 = vperm.slane %v767_v16, 5 }
  0xad   : > { %v366_v35 = vmul.f32 %v364_v25, %v362_v14  ;;  %v367_v38 = vmul.f32 %v365_v26, %v362_v14  ;;  %v404_v6 = vmul.f32 %v402_v62, %v400_v34  ;;  %v405_v7 = vmul.f32 %v403_v57, %v400_v34 }
  0xae   : > { %v422_v10 = vperm.slane %v765_v15, 6  ;;  %v423_v11 = vperm.slane %v767_v16, 6  ;;  %v787_v14 = vmax.f32 %v353_v4, 0.0  ;;  %v430_v59 = vpop.permute.xlu0 %429  ;;  %v443_v26 = vperm.slane %v789_v17, 0 }
  0xaf   : > { %v376_v46 = vadd.f32 %v374_v40, %v366_v35  ;;  %v377_v47 = vadd.f32 %v375_v41, %v367_v38  ;;  %v432_v27 = vperm.slane %v765_v15, 7  ;;  %v433_v28 = vperm.slane %v767_v16, 7 }
  0xb0   : > { %v424_v20 = vmul.f32 %v422_v10, %v420_v58  ;;  %v425_v21 = vmul.f32 %v423_v11, %v420_v58  ;;  %v450_v23 = vpop.permute.xlu2 %449  ;;  %v442_v25 = vperm.slane %v787_v14, 0  ;;  %v452_v39 = vperm.slane %v787_v14, 1 }
  0xb1   : > { %v386_v60 = vadd.f32 %v384_v51, %v376_v46  ;;  %v387_v61 = vadd.f32 %v385_v52, %v377_v47  ;;  %v434_v32 = vmul.f32 %v432_v27, %v430_v59  ;;  %v435_v33 = vmul.f32 %v433_v28, %v430_v59 }
  0xb2   : > { %v453_v24 = vperm.slane %v789_v17, 1  ;;  %v462_v40 = vperm.slane %v787_v14, 2  ;;  %v463_v15 = vperm.slane %v789_v17, 2  ;;  %v454_v16 = vmul.f32 %v452_v39, %v450_v23 }
  0xb3   : > { %v482_v55 = vperm.slane %v787_v14, 4  ;;  %v483_v56 = vperm.slane %v789_v17, 4  ;;  %v492_v57 = vperm.slane %v787_v14, 5  ;;  %v493_v58 = vperm.slane %v789_v17, 5 }
  0xb4   : > { %v455_v42 = vmul.f32 %v453_v24, %v450_v23 }
  0xb5   : > { %v390_v36 = vpop.permute.xlu1 %389 }
  0xb6   : > { %v394_v53 = vmul.f32 %v392_v48, %v390_v36  ;;  %v395_v54 = vmul.f32 %v393_v49, %v390_v36  ;;  %v472_v48 = vperm.slane %v787_v14, 3  ;;  %v473_v49 = vperm.slane %v789_v17, 3 }
  0xb8   : > { %v396_v0 = vadd.f32 %v394_v53, %v386_v60  ;;  %v397_v1 = vadd.f32 %v395_v54, %v387_v61  ;;  %v480_v54 = vpop.permute.xlu0 %479 }
  0xb9   : > { %v470_v45 = vpop.permute.xlu2 %469 }
  0xba   : > { %v406_v12 = vadd.f32 %v404_v6, %v396_v0  ;;  %v407_v13 = vadd.f32 %v405_v7, %v397_v1  ;;  %v474_v52 = vmul.f32 %v472_v48, %v470_v45  ;;  %v475_v53 = vmul.f32 %v473_v49, %v470_v45 }
  0xbb   : > { %v485_v0 = vmul.f32 %v483_v56, %v480_v54  ;;  %v502_v6 = vperm.slane %v787_v14, 6  ;;  %v503_v7 = vperm.slane %v789_v17, 6 }
  0xbe   : > { %v410_v63 = vpop.permute.xlu1 %409 }
  0xbf   : > { %v414_v8 = vmul.f32 %v412_v2, %v410_v63  ;;  %v415_v9 = vmul.f32 %v413_v3, %v410_v63  ;;  %v484_v63 = vmul.f32 %v482_v55, %v480_v54 }
  0xc1   : > { %v416_v18 = vadd.f32 %v414_v8, %v406_v12  ;;  %v417_v19 = vadd.f32 %v415_v9, %v407_v13  ;;  %v512_v12 = vperm.slane %v787_v14, 7  ;;  %v513_v13 = vperm.slane %v789_v17, 7 }
  0xc2   : > { %v500_v3 = vpop.permute.xlu2 %499 }
  0xc3   : > { %v426_v29 = vadd.f32 %v424_v20, %v416_v18  ;;  %v427_v30 = vadd.f32 %v425_v21, %v417_v19  ;;  %v504_v10 = vmul.f32 %v502_v6, %v500_v3  ;;  %v505_v11 = vmul.f32 %v503_v7, %v500_v3 }
  0xc5   : > { %v436_v38 = vadd.f32 %v434_v32, %v426_v29  ;;  %v437_v36 = vadd.f32 %v435_v33, %v427_v30 }
  0xc7   : > { %v440_v22 = vpop.permute.xlu1 %439 }
  0xc8   : > { %v444_v34 = vmul.f32 %v442_v25, %v440_v22  ;;  %v445_v35 = vmul.f32 %v443_v26, %v440_v22 }
  0xca   : > { %v446_v31 = vadd.f32 %v444_v34, %v436_v38  ;;  %v447_v37 = vadd.f32 %v445_v35, %v437_v36 }
  0xcb   : > { %v522_v59 = vpop.permute.xlu2 %521 }
  0xcc   : > { %v456_v46 = vadd.f32 %v454_v16, %v446_v31  ;;  %v457_v47 = vadd.f32 %v455_v42, %v447_v37 }
  0xd0   : > { %v460_v41 = vpop.permute.xlu1 %459 }
  0xd1   : > { %v464_v43 = vmul.f32 %v462_v40, %v460_v41  ;;  %v465_v44 = vmul.f32 %v463_v15, %v460_v41 }
  0xd3   : > { %v466_v50 = vadd.f32 %v464_v43, %v456_v46  ;;  %v467_v51 = vadd.f32 %v465_v44, %v457_v47 }
  0xd5   : > { %v476_v60 = vadd.f32 %v474_v52, %v466_v50  ;;  %v477_v61 = vadd.f32 %v475_v53, %v467_v51 }
  0xd7   : > { %v486_v4 = vadd.f32 %v484_v63, %v476_v60  ;;  %v487_v5 = vadd.f32 %v485_v0, %v477_v61 }
  0xd9   : > { %v490_v62 = vpop.permute.xlu1 %489 }
  0xda   : > { %v494_v1 = vmul.f32 %v492_v57, %v490_v62  ;;  %v495_v2 = vmul.f32 %v493_v58, %v490_v62 }
  0xdc   : > { %v496_v8 = vadd.f32 %v494_v1, %v486_v4  ;;  %v497_v9 = vadd.f32 %v495_v2, %v487_v5 }
  0xde   : > { %v506_v21 = vadd.f32 %v504_v10, %v496_v8  ;;  %v507_v22 = vadd.f32 %v505_v11, %v497_v9 }
  0xe2   : > { %v510_v18 = vpop.permute.xlu1 %509 }
  0xe3   : > { %v514_v19 = vmul.f32 %v512_v12, %v510_v18  ;;  %v515_v20 = vmul.f32 %v513_v13, %v510_v18 }
  0xe5   : > { %v516_v23 = vadd.f32 %v514_v19, %v506_v21  ;;  %v517_v25 = vadd.f32 %v515_v20, %v507_v22 }
  0xe7   : > { %v525_v26 = vadd.f32 %v522_v59, %v517_v25  ;;  %v524_v27 = vadd.f32 %v522_v59, %v516_v23 }
  0xe9   : > { %v528_v28 = vrot.slane %v525_v26, 4 }
  0xeb   : > { %v530_v14 = vsel %vm529_vm0, %v524_v27, %v528_v28 }
  0xec   : > { %532 = vst [vmem:[%s226_s15] sm:$0xff] %v530_v14 }
  0xed PF: > { %s15_s18 = sadd.s32 1, %s658_s18  }
  0xee   : > { %p12_p4 = scmp.ge.s32.totalorder %s15_s18, 6  }
  0xf0   :  { %14 = sbr.rel (!%p12_p4) target bundleno = 1 (0x1), region = 70 }

</bundles_post_ra>
